<compile_context>
chip_gen: v5e
topology: v5e:2x2
jax: 0.10.0
libtpu: 0.0.40
codegen_flags: <defaults>
</compile_context>

<pallas_src>
import jax
import jax.numpy as jnp
from jax.experimental import pallas as pl
from jax.experimental.pallas import tpu as pltpu

IN_DIM = 784
HID = 100
OUT_DIM = 10
LANE = 128  # padded lane width for the 100/10-wide dims


def _make_kernel(TB, SUB):
    """Build the fused 3-layer MLP kernel for a (TB, 784) f32 batch tile.

    The tile is processed in SUB-row sub-blocks so the (SUB, 128) f32
    intermediates fit in vregs; weights are loaded once per grid step.
    """
    n_sub = TB // SUB

    def kernel(x_ref, w1_ref, b1_ref, w2_ref, b2_ref, w3_ref, b3_ref, o_ref):
        # Hoist the (small, VMEM-resident) weights/biases out of the sub-loop.
        w1 = w1_ref[...]
        b1 = b1_ref[...]
        w2 = w2_ref[...]
        b2 = b2_ref[...]
        w3 = w3_ref[...]
        b3 = b3_ref[...]

        def sub_block(row):
            # Cast x -> bf16 on the VPU (free filler hidden under the x DMA).
            xb = x_ref[pl.ds(row, SUB), :].astype(jnp.bfloat16)
            # Layer 1: bf16 MXU, f32 accumulate, f32 bias + ReLU.
            h1 = jnp.maximum(
                jnp.dot(xb, w1, preferred_element_type=jnp.float32) + b1, 0.0)
            # Layer 2.
            h2 = jnp.maximum(
                jnp.dot(h1.astype(jnp.bfloat16), w2,
                        preferred_element_type=jnp.float32) + b2, 0.0)
            # Classifier; write bf16 (halves the padded writeback).
            out = jnp.dot(h2.astype(jnp.bfloat16), w3,
                          preferred_element_type=jnp.float32) + b3
            o_ref[pl.ds(row, SUB), :] = out.astype(o_ref.dtype)

        if n_sub == 1:
            sub_block(0)
        else:
            def body(s, carry):
                sub_block(pl.multiple_of(s * SUB, SUB))
                return carry
            jax.lax.fori_loop(0, n_sub, body, 0, unroll=True)

    return kernel


def _choose_tile_rows(B):
    """Pick (TB, B_pad): batch-tile rows and padded batch size.

    Rules (from the perf review):
      * small batches: one latency-dominated tile, 16-row aligned;
      * otherwise prefer the largest tile (up to 1024) such that the grid has
        >= 2 steps (keeps both v7x TensorCores busy) and pad waste <= ~12.5%;
      * awkward sizes fall back to the fewest >=2 tiles of <=512 rows,
        16-row aligned, to bound wasted x DMA.
    """
    if B <= 128:
        tb = max(16, ((B + 15) // 16) * 16)
        return tb, tb
    for tb in (1024, 512, 256, 128):
        n = -(-B // tb)
        if n < 2:
            continue
        b_pad = n * tb
        if (b_pad - B) * 8 <= B:  # waste <= 12.5%
            return tb, b_pad
    n = max(2, -(-B // 512))
    tb = ((-(-B // n)) + 15) // 16 * 16
    return tb, n * tb


def _pad2d(a, rows, cols):
    return jnp.pad(a, ((0, rows - a.shape[0]), (0, cols - a.shape[1])))


def permuted_model_forward(x, params, task_id=0):
    """Forward pass of PermutedModel (mean-weight / eval-mode path).

    x: any shape whose trailing dims flatten to 784 (e.g. (B, 1, 28, 28)).
    task_id: unused by forward(), kept for API parity with the PyTorch module.
    """
    del task_id  # unused in forward(), same as the PyTorch module
    w1, b1, w2, b2, w3, b3 = params
    x2d = x.reshape(-1, IN_DIM).astype(jnp.float32)
    B = x2d.shape[0]

    TB, B_pad = _choose_tile_rows(B)
    if B_pad != B:
        x2d = jnp.pad(x2d, ((0, B_pad - B), (0, 0)))

    # Weights in bf16 (264 KB total, VMEM-resident via constant index_maps);
    # biases stay f32 (bias-add/ReLU on the f32 VPU path). Feature dims are
    # zero-padded to the 128-lane width so all loads/stores are unmasked.
    w1p = _pad2d(w1, IN_DIM, LANE).astype(jnp.bfloat16)
    w2p = _pad2d(w2, LANE, LANE).astype(jnp.bfloat16)
    w3p = _pad2d(w3, LANE, LANE).astype(jnp.bfloat16)
    b1p = _pad2d(b1, 1, LANE).astype(jnp.float32)
    b2p = _pad2d(b2, 1, LANE).astype(jnp.float32)
    b3p = _pad2d(b3, 1, LANE).astype(jnp.float32)

    SUB = 256 if (TB > 256 and TB % 256 == 0) else TB
    kernel = _make_kernel(TB, SUB)

    grid = (B_pad // TB,)
    x_spec = pl.BlockSpec((TB, IN_DIM), lambda i: (i, 0))
    o_spec = pl.BlockSpec((TB, LANE), lambda i: (i, 0))
    const = lambda shape: pl.BlockSpec(shape, lambda i: (0, 0))

    flops = 2 * B_pad * (IN_DIM * LANE + LANE * LANE + LANE * LANE)
    bytes_accessed = (
        x2d.size * 4                                     # x read (f32)
        + (w1p.size + w2p.size + w3p.size) * 2           # bf16 weights
        + (b1p.size + b2p.size + b3p.size) * 4           # f32 biases
        + B_pad * LANE * 2                               # bf16 output slab
    )

    out = pl.pallas_call(
        kernel,
        out_shape=jax.ShapeDtypeStruct((B_pad, LANE), jnp.bfloat16),
        grid=grid,
        in_specs=[
            x_spec,
            const((IN_DIM, LANE)), const((1, LANE)),
            const((LANE, LANE)), const((1, LANE)),
            const((LANE, LANE)), const((1, LANE)),
        ],
        out_specs=o_spec,
        compiler_params=pltpu.CompilerParams(
            dimension_semantics=("parallel",),
        ),
        cost_estimate=pl.CostEstimate(
            flops=int(flops), transcendentals=0,
            bytes_accessed=int(bytes_accessed)),
    )(x2d, w1p, b1p, w2p, b2p, w3p, b3p)

    # Tiny (B, 10) slice; cast back to f32 for API parity with the f32 module.
    return out[:B, :OUT_DIM].astype(jnp.float32)


def init_params(key):
    """Deterministic init of the mean parameters (W_mu / bias_mu) of each BBBLinear.

    Weights are stored (in_features, out_features) so each layer is y = x @ W + b.
    """
    k1, k2, k3 = jax.random.split(key, 3)

    def linear(k, fan_in, fan_out):
        kw, kb = jax.random.split(k)
        scale = 1.0 / jnp.sqrt(fan_in)
        w = jax.random.uniform(kw, (fan_in, fan_out), jnp.float32, -scale, scale)
        b = jax.random.uniform(kb, (1, fan_out), jnp.float32, -scale, scale)
        return w, b

    w1, b1 = linear(k1, IN_DIM, HID)
    w2, b2 = linear(k2, HID, HID)
    w3, b3 = linear(k3, HID, OUT_DIM)
    return (w1, b1, w2, b2, w3, b3)


def _reference_forward(x, params):
    """Pure-JAX reference with the same bf16 quantization points as the kernel."""
    w1, b1, w2, b2, w3, b3 = params
    xb = x.reshape(-1, IN_DIM).astype(jnp.bfloat16)
    h1 = jnp.dot(xb, w1.astype(jnp.bfloat16),
                 preferred_element_type=jnp.float32) + b1
    h1 = jnp.maximum(h1, 0.0)
    h2 = jnp.dot(h1.astype(jnp.bfloat16), w2.astype(jnp.bfloat16),
                 preferred_element_type=jnp.float32) + b2
    h2 = jnp.maximum(h2, 0.0)
    return jnp.dot(h2.astype(jnp.bfloat16), w3.astype(jnp.bfloat16),
                   preferred_element_type=jnp.float32) + b3


if __name__ == "__main__":
    key = jax.random.PRNGKey(0)
    kx, kx2, kp = jax.random.split(key, 3)

    params = init_params(kp)

    # Small test: batch=2, 1x28x28 (single latency-dominated tile).
    x_small = jax.random.normal(kx, (2, 1, 28, 28), jnp.float32)
    out_small = jax.block_until_ready(
        permuted_model_forward(x_small, params, task_id=0))
    ref_small = _reference_forward(x_small, params)
    assert out_small.shape == (2, OUT_DIM), out_small.shape
    assert jnp.allclose(out_small, ref_small, atol=2e-2, rtol=2e-2), \
        "small-batch mismatch vs reference"

    # Larger test: exercises the multi-tile grid and 256-row sub-block path.
    x_big = jax.random.normal(kx2, (1536, 1, 28, 28), jnp.float32)
    out_big = jax.block_until_ready(
        permuted_model_forward(x_big, params, task_id=0))
    ref_big = _reference_forward(x_big, params)
    assert out_big.shape == (1536, OUT_DIM), out_big.shape
    assert jnp.allclose(out_big, ref_big, atol=2e-2, rtol=2e-2), \
        "large-batch mismatch vs reference"

    print("KERNEL_OK")
</pallas_src>

<mosaic_0001>
module attributes {stable_mosaic.version = 11 : i64} {
  func.func @kernel(%arg0: i32, %arg1: memref<16x784xf32, #tpu.memory_space<vmem>>, %arg2: memref<784x128xbf16, #tpu.memory_space<vmem>>, %arg3: memref<1x128xf32, #tpu.memory_space<vmem>>, %arg4: memref<128x128xbf16, #tpu.memory_space<vmem>>, %arg5: memref<1x128xf32, #tpu.memory_space<vmem>>, %arg6: memref<128x128xbf16, #tpu.memory_space<vmem>>, %arg7: memref<1x128xf32, #tpu.memory_space<vmem>>, %arg8: memref<16x128xbf16, #tpu.memory_space<vmem>>) attributes {dimension_semantics = [#tpu.dimension_semantics<parallel>], iteration_bounds = array<i64: 1>, scalar_prefetch = 0 : i64, scratch_operands = 0 : i64, tpu.core_type = #tpu.core_type<tc>, window_params = [{transform_indices = @transform_0, window_bounds = array<i64: 16, 784>}, {pipeline_mode = #tpu.pipeline_mode<synchronous>, transform_indices = @transform_1, window_bounds = array<i64: 784, 128>}, {pipeline_mode = #tpu.pipeline_mode<synchronous>, transform_indices = @transform_2, window_bounds = array<i64: 1, 128>}, {pipeline_mode = #tpu.pipeline_mode<synchronous>, transform_indices = @transform_3, window_bounds = array<i64: 128, 128>}, {pipeline_mode = #tpu.pipeline_mode<synchronous>, transform_indices = @transform_4, window_bounds = array<i64: 1, 128>}, {pipeline_mode = #tpu.pipeline_mode<synchronous>, transform_indices = @transform_5, window_bounds = array<i64: 128, 128>}, {pipeline_mode = #tpu.pipeline_mode<synchronous>, transform_indices = @transform_6, window_bounds = array<i64: 1, 128>}, {transform_indices = @transform_7, window_bounds = array<i64: 16, 128>}]} {
    %c0 = arith.constant 0 : index
    %c0_0 = arith.constant 0 : index
    %0 = vector.load %arg2[%c0, %c0_0] : memref<784x128xbf16, #tpu.memory_space<vmem>>, vector<784x128xbf16>
    %c0_1 = arith.constant 0 : index
    %c0_2 = arith.constant 0 : index
    %1 = vector.load %arg3[%c0_1, %c0_2] : memref<1x128xf32, #tpu.memory_space<vmem>>, vector<1x128xf32>
    %c0_3 = arith.constant 0 : index
    %c0_4 = arith.constant 0 : index
    %2 = vector.load %arg4[%c0_3, %c0_4] : memref<128x128xbf16, #tpu.memory_space<vmem>>, vector<128x128xbf16>
    %c0_5 = arith.constant 0 : index
    %c0_6 = arith.constant 0 : index
    %3 = vector.load %arg5[%c0_5, %c0_6] : memref<1x128xf32, #tpu.memory_space<vmem>>, vector<1x128xf32>
    %c0_7 = arith.constant 0 : index
    %c0_8 = arith.constant 0 : index
    %4 = vector.load %arg6[%c0_7, %c0_8] : memref<128x128xbf16, #tpu.memory_space<vmem>>, vector<128x128xbf16>
    %c0_9 = arith.constant 0 : index
    %c0_10 = arith.constant 0 : index
    %5 = vector.load %arg7[%c0_9, %c0_10] : memref<1x128xf32, #tpu.memory_space<vmem>>, vector<1x128xf32>
    %c0_11 = arith.constant 0 : index
    %c0_12 = arith.constant 0 : index
    %6 = vector.load %arg1[%c0_11, %c0_12] : memref<16x784xf32, #tpu.memory_space<vmem>>, vector<16x784xf32>
    %7 = arith.truncf %6 : vector<16x784xf32> to vector<16x784xbf16>
    %cst = arith.constant dense<0.000000e+00> : vector<16x128xf32>
    %8 = tpu.matmul %7, %0, %cst {dimension_numbers = #tpu.dot_dimension_numbers<[1], [0], [0], [1], [0, 0, 1, 1], [], []>} : vector<16x784xbf16>, vector<784x128xbf16>, vector<16x128xf32> -> vector<16x128xf32>
    %9 = vector.broadcast %1 : vector<1x128xf32> to vector<16x128xf32>
    %10 = arith.addf %8, %9 : vector<16x128xf32>
    %cst_13 = arith.constant 0.000000e+00 : f32
    %11 = vector.broadcast %cst_13 : f32 to vector<16x128xf32>
    %12 = arith.maximumf %10, %11 : vector<16x128xf32>
    %13 = arith.truncf %12 : vector<16x128xf32> to vector<16x128xbf16>
    %cst_14 = arith.constant dense<0.000000e+00> : vector<16x128xf32>
    %14 = tpu.matmul %13, %2, %cst_14 {dimension_numbers = #tpu.dot_dimension_numbers<[1], [0], [0], [1], [0, 0, 1, 1], [], []>} : vector<16x128xbf16>, vector<128x128xbf16>, vector<16x128xf32> -> vector<16x128xf32>
    %15 = vector.broadcast %3 : vector<1x128xf32> to vector<16x128xf32>
    %16 = arith.addf %14, %15 : vector<16x128xf32>
    %cst_15 = arith.constant 0.000000e+00 : f32
    %17 = vector.broadcast %cst_15 : f32 to vector<16x128xf32>
    %18 = arith.maximumf %16, %17 : vector<16x128xf32>
    %19 = arith.truncf %18 : vector<16x128xf32> to vector<16x128xbf16>
    %cst_16 = arith.constant dense<0.000000e+00> : vector<16x128xf32>
    %20 = tpu.matmul %19, %4, %cst_16 {dimension_numbers = #tpu.dot_dimension_numbers<[1], [0], [0], [1], [0, 0, 1, 1], [], []>} : vector<16x128xbf16>, vector<128x128xbf16>, vector<16x128xf32> -> vector<16x128xf32>
    %21 = vector.broadcast %5 : vector<1x128xf32> to vector<16x128xf32>
    %22 = arith.addf %20, %21 : vector<16x128xf32>
    %23 = arith.truncf %22 : vector<16x128xf32> to vector<16x128xbf16>
    %c0_17 = arith.constant 0 : index
    %c0_18 = arith.constant 0 : index
    %24 = vector.load %arg8[%c0_17, %c0_18] : memref<16x128xbf16, #tpu.memory_space<vmem>>, vector<16x128xbf16>
    tpu.vector_store %arg8[%c0_17, %c0_18], %23 {strides = array<i32>} : memref<16x128xbf16, #tpu.memory_space<vmem>>, vector<16x128xbf16>,
    return
  }
  func.func @transform_0(%arg0: i32) -> (i32, i32) {
    %c0_i32 = arith.constant 0 : i32
    %c0_i32_0 = arith.constant 0 : i32
    return %arg0, %c0_i32 : i32, i32
  }
  func.func @transform_1(%arg0: i32) -> (i32, i32) {
    %c0_i32 = arith.constant 0 : i32
    %c0_i32_0 = arith.constant 0 : i32
    %c0_i32_1 = arith.constant 0 : i32
    return %c0_i32, %c0_i32_0 : i32, i32
  }
  func.func @transform_2(%arg0: i32) -> (i32, i32) {
    %c0_i32 = arith.constant 0 : i32
    %c0_i32_0 = arith.constant 0 : i32
    %c0_i32_1 = arith.constant 0 : i32
    return %c0_i32, %c0_i32_0 : i32, i32
  }
  func.func @transform_3(%arg0: i32) -> (i32, i32) {
    %c0_i32 = arith.constant 0 : i32
    %c0_i32_0 = arith.constant 0 : i32
    %c0_i32_1 = arith.constant 0 : i32
    return %c0_i32, %c0_i32_0 : i32, i32
  }
  func.func @transform_4(%arg0: i32) -> (i32, i32) {
    %c0_i32 = arith.constant 0 : i32
    %c0_i32_0 = arith.constant 0 : i32
    %c0_i32_1 = arith.constant 0 : i32
    return %c0_i32, %c0_i32_0 : i32, i32
  }
  func.func @transform_5(%arg0: i32) -> (i32, i32) {
    %c0_i32 = arith.constant 0 : i32
    %c0_i32_0 = arith.constant 0 : i32
    %c0_i32_1 = arith.constant 0 : i32
    return %c0_i32, %c0_i32_0 : i32, i32
  }
  func.func @transform_6(%arg0: i32) -> (i32, i32) {
    %c0_i32 = arith.constant 0 : i32
    %c0_i32_0 = arith.constant 0 : i32
    %c0_i32_1 = arith.constant 0 : i32
    return %c0_i32, %c0_i32_0 : i32, i32
  }
  func.func @transform_7(%arg0: i32) -> (i32, i32) {
    %c0_i32 = arith.constant 0 : i32
    %c0_i32_0 = arith.constant 0 : i32
    return %arg0, %c0_i32 : i32, i32
  }
}

</mosaic_0001>

<bundles_post_ra>
// kernel: tpu_custom_call.1
= control target key start
LH: loop header
LB: loop body
LE: loop exit
PB: predicated region body
PF: predicated region fallthrough
CT: control target
= control target key end

     0   :  { %12 = vsyncpa [#allocation3], 0  ;;  %s1361_s0 = inlined_call_operand.hbm [shape: f32[16,784], index: 0, kind: input, shape index: {}]   ;;  %s1362_s1 = inlined_call_operand.hbm [shape: bf16[784,128], index: 1, kind: input, shape index: {}]   ;;  %s1363_s2 = inlined_call_operand.vmem [shape: f32[1,128], index: 2, kind: input, shape index: {}]   ;;  %s1364_s3 = inlined_call_operand.hbm [shape: bf16[128,128], index: 3, kind: input, shape index: {}]   ;;  %s1365_s4 = inlined_call_operand.vmem [shape: f32[1,128], index: 4, kind: input, shape index: {}]   ;;  %s1366_s5 = inlined_call_operand.hbm [shape: bf16[128,128], index: 5, kind: input, shape index: {}]   ;;  %s1367_s6 = inlined_call_operand.vmem [shape: f32[1,128], index: 6, kind: input, shape index: {}]   ;;  %s1368_s7 = inlined_call_operand.hbm [shape: bf16[16,128], index: 7, kind: output, shape index: {}]  }
   0x1   :  { %13 = vsyncpa [#allocation6], 0 }
   0x2   :  { %14 = vsyncpa [#allocation9], 0  ;;  %s33_s26 = sshll.u32 %s1362_s1, 4  ;;  %s34_s26 = int_to_ptr.hbm [resolvable:$true] %s33_s26 }
   0x3   :  { %15 = vsyncpa [#allocation4], 0  ;;  %s1276_s27 = smov [#allocation5]   ;;  %s20_s8 = sshll.u32 %s1361_s0, 4  ;;  %s21_s8 = int_to_ptr.hbm [resolvable:$true] %s20_s8 }
   0x4   :  { %s35_s28 = sshll.u32 %s1276_s27, 4  ;;  %s1277_s9 = smov 64   ;;  %s36_s28 = int_to_ptr.vmem [resolvable:$true] %s35_s28 }
   0x5   :  { %s1278_s10 = smov 4   ;;  %s1279_s11 = smov [#allocation2]  }
   0x6   :  { %41 = dma.hbm_to_vmem [thread:$0]  %s34_s26, 6272, %s36_s28, [#allocation6], %s1277_s9, %s1277_s9, %s1278_s10  }
   0x7   :  { %s22_s12 = sshll.u32 %s1279_s11, 4  ;;  %s1280_s1 = smov 896   ;;  %s23_s12 = int_to_ptr.vmem [resolvable:$true] %s22_s12 }
   0x8   :  { %s1281_s13 = smov 56   ;;  %s48_s16 = sshll.u32 %s1364_s3, 4  ;;  %s49_s16 = int_to_ptr.hbm [resolvable:$true] %s48_s16 }
   0x9   :  { %28 = dma.hbm_to_vmem [thread:$0]  %s21_s8, 1792, %s23_s12, [#allocation3], %s1280_s1, %s1280_s1, %s1281_s13  }
   0xa   :  { %s1282_s17 = smov [#allocation7]   ;;  %s63_s20 = sshll.u32 %s1366_s5, 4  ;;  %s64_s20 = int_to_ptr.hbm [resolvable:$true] %s63_s20 }
   0xb   :  { %s50_s0 = sshll.u32 %s1282_s17, 4  ;;  %s1283_s21 = smov [#allocation8]   ;;  %s51_s0 = int_to_ptr.vmem [resolvable:$true] %s50_s0 }
   0xc   :  { %56 = dma.hbm_to_vmem [thread:$0]  %s49_s16, 1024, %s51_s0, [#allocation6], %s1277_s9, %s1277_s9, %s1278_s10  }
   0xd   :  { %s65_s22 = sshll.u32 %s1283_s21, 4  ;;  %s66_s22 = int_to_ptr.vmem [resolvable:$true] %s65_s22 }
   0xe   :  { %71 = dma.hbm_to_vmem [thread:$0]  %s64_s20, 1024, %s66_s22, [#allocation9], %s1277_s9, %s1277_s9, %s1278_s10  }
   0xf   :  { %1268 = dma.done.wait [#allocation3], 1792  }
  0x10   :  { %1269 = vsyncadd [#allocation3], 4294965504 }
  0x11   :  { %1270 = dma.done.wait [#allocation6], 7296  }
  0x12   :  { %1271 = vsyncadd [#allocation6], 4294960000 }
  0x13   :  { %1272 = dma.done.wait [#allocation9], 1024  }
  0x14   :  { %1273 = vsyncadd [#allocation9], 4294966272  ;;  %v1073_v0 = vld [vmem:[#allocation5 + $0x38] sm:$0xff]  ;;  %v1072_v4 = vld [vmem:[#allocation5 + $0x30] sm:$0xff]  ;;  %vm542_vm0 = vcmask 130048   ;;  %s1284_s26 = smov [#allocation10]  }
  0x15   :  { %v1081_v1 = vld [vmem:[#allocation5 + $0x78] sm:$0xff]  ;;  %546 = vmatpush.bf16.msra.mxu0 %v1073_v0  ;;  %v1080_v5 = vld [vmem:[#allocation5 + $0x70] sm:$0xff]  ;;  %v1071_v8 = vld [vmem:[#allocation5 + $0x28] sm:$0xff]  ;;  %s788_s27 = sshll.u32 %s1284_s26, 4  ;;  %s790_s30 = sshll.u32 %s1368_s7, 4  ;;  %s789_s27 = int_to_ptr.vmem [resolvable:$true] %s788_s27  ;;  %s791_s30 = int_to_ptr.hbm [resolvable:$true] %s790_s30 }
  0x16   :  { %v1089_v2 = vld [vmem:[#allocation5 + $0xb8] sm:$0xff]  ;;  %560 = vmatpush.bf16.msra.mxu1 %v1081_v1  ;;  %v1088_v6 = vld [vmem:[#allocation5 + $0xb0] sm:$0xff]  ;;  %v1079_v9 = vld [vmem:[#allocation5 + $0x68] sm:$0xff] }
  0x17   :  { %v1097_v3 = vld [vmem:[#allocation5 + $0xf8] sm:$0xff]  ;;  %574 = vmatpush.bf16.msra.mxu2 %v1089_v2  ;;  %v1096_v7 = vld [vmem:[#allocation5 + $0xf0] sm:$0xff]  ;;  %v1087_v10 = vld [vmem:[#allocation5 + $0xa8] sm:$0xff] }
  0x18   :  { %588 = vmatpush.bf16.msra.mxu3 %v1097_v3  ;;  %v1095_v11 = vld [vmem:[#allocation5 + $0xe8] sm:$0xff]  ;;  %v1070_v12 = vld [vmem:[#allocation5 + $0x20] sm:$0xff]  ;;  %v1069_v16 = vld [vmem:[#allocation5 + $0x18] sm:$0xff] }
  0x19   :  { %547 = vmatpush.bf16.msra.mxu0 %v1072_v4  ;;  %v1078_v13 = vld [vmem:[#allocation5 + $0x60] sm:$0xff]  ;;  %v1077_v17 = vld [vmem:[#allocation5 + $0x58] sm:$0xff]  ;;  %v1068_v20 = vld [vmem:[#allocation5 + $0x10] sm:$0xff] }
  0x1a   :  { %561 = vmatpush.bf16.msra.mxu1 %v1080_v5  ;;  %v1086_v14 = vld [vmem:[#allocation5 + $0xa0] sm:$0xff]  ;;  %v1085_v18 = vld [vmem:[#allocation5 + $0x98] sm:$0xff]  ;;  %v1076_v21 = vld [vmem:[#allocation5 + $0x50] sm:$0xff] }
  0x1b   :  { %575 = vmatpush.bf16.msra.mxu2 %v1088_v6  ;;  %v1094_v15 = vld [vmem:[#allocation5 + $0xe0] sm:$0xff]  ;;  %v1093_v19 = vld [vmem:[#allocation5 + $0xd8] sm:$0xff]  ;;  %v1084_v22 = vld [vmem:[#allocation5 + $0x90] sm:$0xff] }
  0x1c   :  { %589 = vmatpush.bf16.msra.mxu3 %v1096_v7  ;;  %v1092_v23 = vld [vmem:[#allocation5 + $0xd0] sm:$0xff]  ;;  %v1067_v24 = vld [vmem:[#allocation5 + $0x8] sm:$0xff]  ;;  %v1066_v28 = vld [vmem:[#allocation5] sm:$0xff] }
  0x1d   :  { %548 = vmatpush.bf16.msra.mxu0 %v1071_v8  ;;  %v1075_v25 = vld [vmem:[#allocation5 + $0x48] sm:$0xff]  ;;  %v1074_v29 = vld [vmem:[#allocation5 + $0x40] sm:$0xff]  ;;  %v224_v30 = vld [vmem:[#allocation2] sm:$0xff] }
  0x1e   :  { %562 = vmatpush.bf16.msra.mxu1 %v1079_v9  ;;  %v1083_v26 = vld [vmem:[#allocation5 + $0x88] sm:$0xff]  ;;  %v225_v32 = vld [vmem:[#allocation2 + $0x8] sm:$0xff]  ;;  %v232_v33 = vld [vmem:[#allocation2 + $0x40] sm:$0xff] }
  0x1f   :  { %576 = vmatpush.bf16.msra.mxu2 %v1087_v10  ;;  %v1091_v27 = vld [vmem:[#allocation5 + $0xc8] sm:$0xff]  ;;  %v1105_v34 = vld [vmem:[#allocation5 + $0x138] sm:$0xff]  ;;  %v1082_v36 = vld [vmem:[#allocation5 + $0x80] sm:$0xff]  ;;  %v239_v43 = vpack.c.bf16 %v232_v33, %v225_v32 }
  0x20   :  { %590 = vmatpush.bf16.msra.mxu3 %v1095_v11  ;;  %v231_v31 = vld [vmem:[#allocation2 + $0x38] sm:$0xff]  ;;  %v1113_v35 = vld [vmem:[#allocation5 + $0x178] sm:$0xff]  ;;  %v1090_v37 = vld [vmem:[#allocation5 + $0xc0] sm:$0xff] }
  0x21   :  { %549 = vmatpush.bf16.msra.mxu0 %v1070_v12  ;;  %v226_v38 = vld [vmem:[#allocation2 + $0x10] sm:$0xff]  ;;  %v233_v39 = vld [vmem:[#allocation2 + $0x48] sm:$0xff]  ;;  %v238_v40 = vpack.c.bf16 %v231_v31, %v224_v30  ;;  %v227_v41 = vld [vmem:[#allocation2 + $0x18] sm:$0xff] }
  0x22   :  { %563 = vmatpush.bf16.msra.mxu1 %v1078_v13  ;;  %v234_v42 = vld [vmem:[#allocation2 + $0x50] sm:$0xff]  ;;  %v1104_v45 = vld [vmem:[#allocation5 + $0x130] sm:$0xff]  ;;  %v240_v47 = vpack.c.bf16 %v233_v39, %v226_v38  ;;  %v1103_v49 = vld [vmem:[#allocation5 + $0x128] sm:$0xff] }
  0x23   :  { %577 = vmatpush.bf16.msra.mxu2 %v1086_v14  ;;  %v1114_v44 = vld [vmem:[#allocation5 + $0x180] sm:$0xff]  ;;  %v1112_v46 = vld [vmem:[#allocation5 + $0x170] sm:$0xff]  ;;  %v241_v48 = vpack.c.bf16 %v234_v42, %v227_v41  ;;  %v1111_v50 = vld [vmem:[#allocation5 + $0x168] sm:$0xff] }
  0x24   :  { %591 = vmatpush.bf16.msra.mxu3 %v1094_v15  ;;  %v1102_v51 = vld [vmem:[#allocation5 + $0x120] sm:$0xff]  ;;  %v1101_v53 = vld [vmem:[#allocation5 + $0x118] sm:$0xff]  ;;  %v1100_v57 = vld [vmem:[#allocation5 + $0x110] sm:$0xff] }
  0x25   :  { %550 = vmatpush.bf16.msra.mxu0 %v1069_v16  ;;  %v1110_v52 = vld [vmem:[#allocation5 + $0x160] sm:$0xff]  ;;  %v1109_v54 = vld [vmem:[#allocation5 + $0x158] sm:$0xff]  ;;  %v1108_v58 = vld [vmem:[#allocation5 + $0x150] sm:$0xff] }
  0x26   :  { %564 = vmatpush.bf16.msra.mxu1 %v1077_v17  ;;  %v230_v55 = vld [vmem:[#allocation2 + $0x30] sm:$0xff]  ;;  %v237_v56 = vld [vmem:[#allocation2 + $0x68] sm:$0xff]  ;;  %v1099_v60 = vld [vmem:[#allocation5 + $0x108] sm:$0xff] }
  0x27   :  { %578 = vmatpush.bf16.msra.mxu2 %v1085_v18  ;;  %v244_v59 = vpack.c.bf16 %v237_v56, %v230_v55  ;;  %v1107_v61 = vld [vmem:[#allocation5 + $0x148] sm:$0xff]  ;;  %v1098_v62 = vld [vmem:[#allocation5 + $0x100] sm:$0xff]  ;;  %v228_v0 = vld [vmem:[#allocation2 + $0x20] sm:$0xff] }
  0x28   :  { %592 = vmatpush.bf16.msra.mxu3 %v1093_v19  ;;  %v1106_v63 = vld [vmem:[#allocation5 + $0x140] sm:$0xff]  ;;  %v235_v1 = vld [vmem:[#allocation2 + $0x58] sm:$0xff]  ;;  %v229_v2 = vld [vmem:[#allocation2 + $0x28] sm:$0xff] }
  0x29   :  { %551 = vmatpush.bf16.msra.mxu0 %v1068_v20  ;;  %v236_v3 = vld [vmem:[#allocation2 + $0x60] sm:$0xff]  ;;  %v242_v4 = vpack.c.bf16 %v235_v1, %v228_v0  ;;  %v1122_v6 = vld [vmem:[#allocation7 + $0x38] sm:$0xff]  ;;  %v1121_v7 = vld [vmem:[#allocation7 + $0x30] sm:$0xff] }
  0x2a   :  { %565 = vmatpush.bf16.msra.mxu1 %v1076_v21  ;;  %v243_v5 = vpack.c.bf16 %v236_v3, %v229_v2  ;;  %v1120_v8 = vld [vmem:[#allocation7 + $0x28] sm:$0xff]  ;;  %v1119_v9 = vld [vmem:[#allocation7 + $0x20] sm:$0xff]  ;;  %v1118_v10 = vld [vmem:[#allocation7 + $0x18] sm:$0xff] }
  0x2b   :  { %579 = vmatpush.bf16.msra.mxu2 %v1084_v22  ;;  %v1117_v11 = vld [vmem:[#allocation7 + $0x10] sm:$0xff]  ;;  %v1116_v12 = vld [vmem:[#allocation7 + $0x8] sm:$0xff]  ;;  %v1115_v16 = vld [vmem:[#allocation7] sm:$0xff] }
  0x2c   :  { %593 = vmatpush.bf16.msra.mxu3 %v1092_v23  ;;  %v1145_v17 = vld [vmem:[%s1363_s2] ss:$0 sm:$0xff]  ;;  %v1130_v18 = vld [vmem:[#allocation8 + $0x38] sm:$0xff]  ;;  %v1129_v20 = vld [vmem:[#allocation8 + $0x30] sm:$0xff] }
  0x2d   :  { %552 = vmatpush.bf16.msra.mxu0 %v1067_v24  ;;  %v1146_v55 = vld [vmem:[%s1365_s4] ss:$0 sm:$0xff] }
  0x2e   :  { %566 = vmatpush.bf16.msra.mxu1 %v1075_v25  ;;  %v1128_v25 = vld [vmem:[#allocation8 + $0x28] sm:$0xff] }
  0x2f   :  { %580 = vmatpush.bf16.msra.mxu2 %v1083_v26 }
  0x30   :  { %594 = vmatpush.bf16.msra.mxu3 %v1091_v27 }
  0x31   :  { %553 = vmatpush.bf16.msra.mxu0 %v1066_v28 }
  0x32   :  { %567 = vmatpush.bf16.msra.mxu1 %v1074_v29  ;;  %v1127_v29 = vld [vmem:[#allocation8 + $0x20] sm:$0xff] }
  0x33   :  { %581 = vmatpush.bf16.msra.mxu2 %v1082_v36 }
  0x34   :  { %595 = vmatpush.bf16.msra.mxu3 %v1090_v37  ;;  %554 = vmatmul.bf16.vlgmr.msra.gmra.mxu0 %v238_v40 }
  0x35   :  { %602 = vmatpush.bf16.msrb.mxu0 %v1105_v34  ;;  %568 = vmatmul.bf16.vlgmr.msra.gmra.mxu1 %v239_v43 }
  0x36   :  { %616 = vmatpush.bf16.msrb.mxu1 %v1113_v35  ;;  %582 = vmatmul.bf16.vlgmr.msra.gmra.mxu2 %v240_v47 }
  0x37   :  { %637 = vmatpush.bf16.msrb.mxu2 %v1114_v44  ;;  %596 = vmatmul.bf16.vlgmr.msra.gmra.mxu3 %v241_v48 }
  0x38   :  { %698 = vmatpush.bf16.msrb.mxu3 %v1122_v6 }
  0x39   :  { %603 = vmatpush.bf16.msrb.mxu0 %v1104_v45 }
  0x3a   :  { %617 = vmatpush.bf16.msrb.mxu1 %v1112_v46 }
  0x3b   :  { %766 = vmatpush.bf16.msra.mxu2 %v1130_v18 }
  0x3c   :  { %699 = vmatpush.bf16.msrb.mxu3 %v1121_v7 }
  0x3d   :  { %604 = vmatpush.bf16.msrb.mxu0 %v1103_v49 }
  0x3e   :  { %618 = vmatpush.bf16.msrb.mxu1 %v1111_v50  ;;  %v1126_v50 = vld [vmem:[#allocation8 + $0x18] sm:$0xff] }
  0x3f   :  { %767 = vmatpush.bf16.msra.mxu2 %v1129_v20 }
  0x40   :  { %700 = vmatpush.bf16.msrb.mxu3 %v1120_v8 }
  0x41   :  { %605 = vmatpush.bf16.msrb.mxu0 %v1102_v51  ;;  %v1125_v51 = vld [vmem:[#allocation8 + $0x10] sm:$0xff] }
  0x42   :  { %619 = vmatpush.bf16.msrb.mxu1 %v1110_v52  ;;  %v1124_v52 = vld [vmem:[#allocation8 + $0x8] sm:$0xff] }
  0x43   :  { %768 = vmatpush.bf16.msra.mxu2 %v1128_v25 }
  0x44   :  { %701 = vmatpush.bf16.msrb.mxu3 %v1119_v9 }
  0x45   :  { %606 = vmatpush.bf16.msrb.mxu0 %v1101_v53  ;;  %v1123_v53 = vld [vmem:[#allocation8] sm:$0xff] }
  0x46   :  { %620 = vmatpush.bf16.msrb.mxu1 %v1109_v54  ;;  %1001 = vmatmul.msk.bf16.vlgmr.msrb.gmra.mxu2 %vm542_vm0, %v244_v59 }
  0x47   :  { %769 = vmatpush.bf16.msra.mxu2 %v1127_v29 }
  0x48   :  { %702 = vmatpush.bf16.msrb.mxu3 %v1118_v10 }
  0x49   :  { %607 = vmatpush.bf16.msrb.mxu0 %v1100_v57 }
  0x4a   :  { %621 = vmatpush.bf16.msrb.mxu1 %v1108_v58 }
  0x4b   :  { %770 = vmatpush.bf16.msra.mxu2 %v1126_v50 }
  0x4c   :  { %703 = vmatpush.bf16.msrb.mxu3 %v1117_v11 }
  0x4d   :  { %608 = vmatpush.bf16.msrb.mxu0 %v1099_v60 }
  0x4e   :  { %622 = vmatpush.bf16.msrb.mxu1 %v1107_v61 }
  0x4f   :  { %771 = vmatpush.bf16.msra.mxu2 %v1125_v51 }
  0x50   :  { %704 = vmatpush.bf16.msrb.mxu3 %v1116_v12 }
  0x51   :  { %609 = vmatpush.bf16.msrb.mxu0 %v1098_v62 }
  0x52   :  { %623 = vmatpush.bf16.msrb.mxu1 %v1106_v63  ;;  %v1147_v63 = vld [vmem:[%s1367_s6] ss:$0 sm:$0xff] }
  0x53   :  { %772 = vmatpush.bf16.msra.mxu2 %v1124_v52 }
  0x54   :  { %610 = vmatmul.bf16.vlgmr.msrb.gmra.mxu0 %v242_v4  ;;  %705 = vmatpush.bf16.msrb.mxu3 %v1115_v16 }
  0x55   :  { %624 = vmatmul.bf16.vlgmr.msrb.gmra.mxu1 %v243_v5 }
  0x57   :  { %773 = vmatpush.bf16.msra.mxu2 %v1123_v53 }
  0xb1   :  { %v555_v13 = vpop.f32.mrf.mxu0 }
  0xb2   :  { %v569_v14 = vpop.f32.mrf.mxu1  ;;  %v556_v19 = vadd.f32 %v1145_v17, %v555_v13 }
  0xb4   :  { %v570_v24 = vadd.f32 %v569_v14, %v556_v19 }
  0xb9   :  { %v583_v15 = vpop.f32.mrf.mxu2  ;;  %v557_v21 = vpop.f32.mrf.mxu0 }
  0xba   :  { %v571_v22 = vpop.f32.mrf.mxu1  ;;  %v597_v26 = vpop.f32.mrf.mxu3  ;;  %v558_v27 = vadd.f32 %v1145_v17, %v557_v21  ;;  %v584_v28 = vadd.f32 %v583_v15, %v570_v24 }
  0xbc   :  { %v572_v30 = vadd.f32 %v571_v22, %v558_v27  ;;  %v598_v33 = vadd.f32 %v597_v26, %v584_v28 }
  0xc1   :  { %v585_v23 = vpop.f32.mrf.mxu2 }
  0xc2   :  { %v586_v35 = vadd.f32 %v585_v23, %v572_v30  ;;  %v599_v37 = vpop.f32.mrf.mxu3 }
  0xc4   :  { %v600_v38 = vadd.f32 %v599_v37, %v586_v35 }
  0xc9   :  { %v639_v34 = vpop.f32.mrf.mxu2 }
  0xd1   :  { %v611_v31 = vpop.f32.mrf.mxu0  ;;  %v641_v45 = vpop.f32.mrf.mxu2 }
  0xd2   :  { %v625_v32 = vpop.f32.mrf.mxu1  ;;  %v612_v36 = vadd.f32 %v611_v31, %v598_v33 }
  0xd4   :  { %v626_v39 = vadd.f32 %v625_v32, %v612_v36 }
  0xd6   :  { %v640_v43 = vadd.f32 %v639_v34, %v626_v39 }
  0xd8   :  { %v644_v47 = vmax.f32 %v640_v43, 0.0 }
  0xd9   :  { %v613_v40 = vpop.f32.mrf.mxu0 }
  0xda   :  { %v614_v41 = vadd.f32 %v613_v40, %v600_v38  ;;  %v627_v42 = vpop.f32.mrf.mxu1 }
  0xdc   :  { %v628_v44 = vadd.f32 %v627_v42, %v614_v41 }
  0xde   :  { %v642_v46 = vadd.f32 %v641_v45, %v628_v44 }
  0xe0   :  { %v645_v48 = vmax.f32 %v642_v46, 0.0 }
  0xe2   :  { %v646_v49 = vpack.c.bf16 %v645_v48, %v644_v47 }
  0xe4   :  { %706 = vmatmul.bf16.vlgmr.msrb.gmra.mxu3 %v646_v49 }
 0x167   :  { %v707_v54 = vpop.f32.mrf.mxu3 }
 0x168   :  { %v708_v56 = vadd.f32 %v1146_v55, %v707_v54 }
 0x16a   :  { %v712_v59 = vmax.f32 %v708_v56, 0.0 }
 0x16f   :  { %v709_v57 = vpop.f32.mrf.mxu3 }
 0x170   :  { %v710_v58 = vadd.f32 %v1146_v55, %v709_v57 }
 0x172   :  { %v713_v60 = vmax.f32 %v710_v58, 0.0 }
 0x174   :  { %v714_v61 = vpack.c.bf16 %v713_v60, %v712_v59 }
 0x176   :  { %774 = vmatmul.bf16.vlgmr.msra.gmra.mxu2 %v714_v61 }
 0x1f9   :  { %v775_v62 = vpop.f32.mrf.mxu2 }
 0x1fa   :  { %v776_v1 = vadd.f32 %v1147_v63, %v775_v62 }
 0x201   :  { %v777_v0 = vpop.f32.mrf.mxu2 }
 0x202   :  { %v778_v2 = vadd.f32 %v1147_v63, %v777_v0 }
 0x204   :  { %v1134_v3 = vpack.c.bf16 %v778_v2, %v776_v1 }
 0x206   :  { %1135 = vst [vmem:[#allocation10] sm:$0xff] %v1134_v3  }
 0x207   :  { %796 = dma.vmem_to_hbm [thread:$0]  %s789_s27, 128, %s791_s30, [#allocation4], %s1277_s9, %s1277_s9, %s1278_s10  }
 0x208   :  { %1274 = dma.done.wait [#allocation4], 128  }
 0x209   :  { %1275 = vsyncadd [#allocation4], 4294967168 }
 0x20a   :  { %801 = vsyncpa [#allocation3], 1 }
 0x20b   :  { %802 = vsyncpa [#allocation6], 1 }
 0x20c   :  { %803 = vsyncpa [#allocation9], 1 }
 0x20d   :  { %804 = vsyncpa [#allocation4], 1 }

</bundles_post_ra>
